<compile_context>
chip_gen: v6e
topology: v6e:2x2x1
jax: 0.10.0
libtpu: 0.0.40
codegen_flags: <defaults>
</compile_context>

<pallas_src>
import functools
import math

import jax
import jax.numpy as jnp
import numpy as np
from jax.experimental import pallas as pl
from jax.experimental.pallas import tpu as pltpu


def _round_up(x, m):
    return ((x + m - 1) // m) * m


def _dwsep_kernel(x_ref, w_ref, o_ref, *, Wp, K, Cin_pad, QLp):
    """One batch element per grid step.

    x_ref : (1, Cin_pad, Lp)        flattened, zero-padded image (lane-dense)
    w_ref : (Cout, K*K*Cin_pad)     fused depthwise*pointwise weight
    o_ref : (1, Cout, QLp)          lane-dense output, QLp = round_up(H*Wp,128)
    """
    # im2col patch matrix: each conv tap (kh, kw) is a contiguous lane strip of
    # the flattened padded image.  Offsets are static Python ints, and each tap
    # is a full 8-sublane group (Cin_pad=8 for f32), so the concat is
    # vreg-granular — no half-vreg sublane shuffles.
    taps = []
    for kh in range(K):
        for kw in range(K):
            off = kh * Wp + kw
            taps.append(x_ref[0, :, pl.ds(off, QLp)])      # (Cin_pad, QLp)
    patches = jnp.concatenate(taps, axis=0)                # (K*K*Cin_pad, QLp)

    # Single fused MXU matmul + ReLU, f32 accumulation.
    y = jnp.dot(w_ref[...], patches, preferred_element_type=jnp.float32)
    o_ref[0] = jnp.maximum(y, 0.0).astype(o_ref.dtype)


def _same_pad(i, k, s, d):
    return max((math.ceil(i / s) - 1) * s + (k - 1) * d + 1 - i, 0)


def dwsep_conv2d(x_nchw, dw_weight, pw_weight):
    """x_nchw: (N, Cin, H, W); dw_weight: (Cin, 1, K, K) (PyTorch depthwise);
    pw_weight: (Cout, Cin, 1, 1) (PyTorch pointwise). Returns (N, Cout, H, W)."""
    N, Cin, H, W = x_nchw.shape
    K = dw_weight.shape[-1]
    Cout = pw_weight.shape[0]
    compute_dtype = x_nchw.dtype          # explicit: weights follow the input

    # 'same' padding (stride=1, dilation=1), matching Conv2DSamePad.
    pad_h = _same_pad(H, K, 1, 1)
    pad_w = _same_pad(W, K, 1, 1)
    pt, pb = pad_h // 2, pad_h - pad_h // 2
    plft, prt = pad_w // 2, pad_w - pad_w // 2
    Hp, Wp = H + pad_h, W + pad_w

    # Lane-dense geometry: output strip padded to a multiple of 128 lanes; the
    # flattened image gets enough extra (zero) bottom rows that every tap strip
    # of length QLp stays in-bounds.  Cin padded to a full f32 sublane group.
    QL = H * Wp                                   # valid output lanes
    QLp = _round_up(QL, 128)                      # lane-dense output width
    max_off = (K - 1) * Wp + (K - 1)              # largest tap offset
    Hp_ext = -(-(max_off + QLp) // Wp)            # ceil((max_off+QLp)/Wp)
    Lp = Hp_ext * Wp
    Cin_pad = max(8, _round_up(Cin, 8))

    # Fused conv weight: Wf[co, kh, kw, ci] = pw[co, ci] * dw[ci, kh, kw].
    # Zero columns for the padded ci; row order (kh, kw, ci) matches the
    # kernel's patch construction.
    dw_k = dw_weight[:, 0, :, :]                          # (Cin, K, K)
    pw_m = pw_weight[:, :, 0, 0]                          # (Cout, Cin)
    wf = jnp.einsum('oc,ckl->oklc', pw_m, dw_k)           # (Cout, K, K, Cin)
    wf = jnp.pad(wf, ((0, 0), (0, 0), (0, 0), (0, Cin_pad - Cin)))
    wf = wf.reshape(Cout, K * K * Cin_pad).astype(compute_dtype)

    # ONE pad covering channel pad, 'same' pad, and the extra tail rows; then a
    # free minor-dim merge to the flattened lane-dense layout.
    x_pad = jnp.pad(
        x_nchw,
        ((0, 0), (0, Cin_pad - Cin), (pt, pb + (Hp_ext - Hp)), (plft, prt)))
    x_flat = x_pad.reshape(N, Cin_pad, Lp)

    kernel = functools.partial(_dwsep_kernel, Wp=Wp, K=K,
                               Cin_pad=Cin_pad, QLp=QLp)

    y = pl.pallas_call(
        kernel,
        out_shape=jax.ShapeDtypeStruct((N, Cout, QLp), compute_dtype),
        grid_spec=pltpu.PrefetchScalarGridSpec(
            num_scalar_prefetch=0,
            grid=(N,),
            in_specs=[
                pl.BlockSpec((1, Cin_pad, Lp), lambda n: (n, 0, 0)),
                pl.BlockSpec((Cout, K * K * Cin_pad), lambda n: (0, 0)),
            ],
            out_specs=pl.BlockSpec((1, Cout, QLp), lambda n: (n, 0, 0)),
        ),
        compiler_params=pltpu.CompilerParams(
            dimension_semantics=("parallel",)),
    )(x_flat, wf)

    # Drop the lane padding, split the minor dim (free), and drop the pad_w
    # garbage columns to get the exact NCHW result (no transposes).
    return y[:, :, :QL].reshape(N, Cout, H, Wp)[:, :, :, :W]


def _reference(x_nchw, dw_weight, pw_weight):
    """Plain-JAX reference (lax conv) for verification."""
    Cin = x_nchw.shape[1]
    dn = jax.lax.conv_dimension_numbers(x_nchw.shape, dw_weight.shape,
                                        ("NCHW", "OIHW", "NCHW"))
    out = jax.lax.conv_general_dilated(
        x_nchw, dw_weight, window_strides=(1, 1), padding="SAME",
        dimension_numbers=dn, feature_group_count=Cin)
    dn2 = jax.lax.conv_dimension_numbers(out.shape, pw_weight.shape,
                                         ("NCHW", "OIHW", "NCHW"))
    out = jax.lax.conv_general_dilated(
        out, pw_weight, window_strides=(1, 1), padding="VALID",
        dimension_numbers=dn2)
    return jnp.maximum(out, 0.0)


if __name__ == "__main__":
    # Small shapes consistent with the module: N=2, Cin=4, Cout=8, H=W=16, K=3.
    N, Cin, Cout, H, W, K = 2, 4, 8, 16, 16, 3

    key = jax.random.PRNGKey(0)
    kx, kdw, kpw = jax.random.split(key, 3)

    x = jax.random.normal(kx, (N, Cin, H, W), dtype=jnp.float32)
    # PyTorch parameter shapes: depthwise (Cin,1,K,K), pointwise (Cout,Cin,1,1),
    # bias=False for both.
    dw_weight = jax.random.normal(kdw, (Cin, 1, K, K), dtype=jnp.float32) * 0.1
    pw_weight = jax.random.normal(kpw, (Cout, Cin, 1, 1), dtype=jnp.float32) * 0.1

    out = dwsep_conv2d(x, dw_weight, pw_weight)
    out = jax.block_until_ready(out)

    ref = jax.block_until_ready(_reference(x, dw_weight, pw_weight))
    np.testing.assert_allclose(np.asarray(out), np.asarray(ref),
                               rtol=1e-5, atol=1e-5)

    print("KERNEL_OK")
</pallas_src>

<mosaic_0001>
module attributes {stable_mosaic.version = 11 : i64} {
  func.func @_dwsep_kernel(%arg0: i32, %arg1: memref<1x8x432xf32, #tpu.memory_space<vmem>>, %arg2: memref<8x72xf32, #tpu.memory_space<vmem>>, %arg3: memref<1x8x384xf32, #tpu.memory_space<vmem>>) attributes {dimension_semantics = [#tpu.dimension_semantics<parallel>], iteration_bounds = array<i64: 2>, scalar_prefetch = 0 : i64, scratch_operands = 0 : i64, tpu.core_type = #tpu.core_type<tc>, window_params = [{transform_indices = @transform_0, window_bounds = array<i64: 1, 8, 432>}, {pipeline_mode = #tpu.pipeline_mode<synchronous>, transform_indices = @transform_1, window_bounds = array<i64: 8, 72>}, {transform_indices = @transform_2, window_bounds = array<i64: 1, 8, 384>}]} {
    %c0 = arith.constant 0 : index
    %c0_0 = arith.constant 0 : index
    %c0_1 = arith.constant 0 : index
    %0 = vector.load %arg1[%c0, %c0_0, %c0_1] : memref<1x8x432xf32, #tpu.memory_space<vmem>>, vector<1x8x384xf32>
    %1 = vector.shape_cast %0 : vector<1x8x384xf32> to vector<8x384xf32>
    %c0_2 = arith.constant 0 : index
    %c0_3 = arith.constant 0 : index
    %c1 = arith.constant 1 : index
    %2 = vector.load %arg1[%c0_2, %c0_3, %c1] : memref<1x8x432xf32, #tpu.memory_space<vmem>>, vector<1x8x384xf32>
    %3 = vector.shape_cast %2 : vector<1x8x384xf32> to vector<8x384xf32>
    %c0_4 = arith.constant 0 : index
    %c0_5 = arith.constant 0 : index
    %c2 = arith.constant 2 : index
    %4 = vector.load %arg1[%c0_4, %c0_5, %c2] : memref<1x8x432xf32, #tpu.memory_space<vmem>>, vector<1x8x384xf32>
    %5 = vector.shape_cast %4 : vector<1x8x384xf32> to vector<8x384xf32>
    %c0_6 = arith.constant 0 : index
    %c0_7 = arith.constant 0 : index
    %c18 = arith.constant 18 : index
    %6 = vector.load %arg1[%c0_6, %c0_7, %c18] : memref<1x8x432xf32, #tpu.memory_space<vmem>>, vector<1x8x384xf32>
    %7 = vector.shape_cast %6 : vector<1x8x384xf32> to vector<8x384xf32>
    %c0_8 = arith.constant 0 : index
    %c0_9 = arith.constant 0 : index
    %c19 = arith.constant 19 : index
    %8 = vector.load %arg1[%c0_8, %c0_9, %c19] : memref<1x8x432xf32, #tpu.memory_space<vmem>>, vector<1x8x384xf32>
    %9 = vector.shape_cast %8 : vector<1x8x384xf32> to vector<8x384xf32>
    %c0_10 = arith.constant 0 : index
    %c0_11 = arith.constant 0 : index
    %c20 = arith.constant 20 : index
    %10 = vector.load %arg1[%c0_10, %c0_11, %c20] : memref<1x8x432xf32, #tpu.memory_space<vmem>>, vector<1x8x384xf32>
    %11 = vector.shape_cast %10 : vector<1x8x384xf32> to vector<8x384xf32>
    %c0_12 = arith.constant 0 : index
    %c0_13 = arith.constant 0 : index
    %c36 = arith.constant 36 : index
    %12 = vector.load %arg1[%c0_12, %c0_13, %c36] : memref<1x8x432xf32, #tpu.memory_space<vmem>>, vector<1x8x384xf32>
    %13 = vector.shape_cast %12 : vector<1x8x384xf32> to vector<8x384xf32>
    %c0_14 = arith.constant 0 : index
    %c0_15 = arith.constant 0 : index
    %c37 = arith.constant 37 : index
    %14 = vector.load %arg1[%c0_14, %c0_15, %c37] : memref<1x8x432xf32, #tpu.memory_space<vmem>>, vector<1x8x384xf32>
    %15 = vector.shape_cast %14 : vector<1x8x384xf32> to vector<8x384xf32>
    %c0_16 = arith.constant 0 : index
    %c0_17 = arith.constant 0 : index
    %c38 = arith.constant 38 : index
    %16 = vector.load %arg1[%c0_16, %c0_17, %c38] : memref<1x8x432xf32, #tpu.memory_space<vmem>>, vector<1x8x384xf32>
    %17 = vector.shape_cast %16 : vector<1x8x384xf32> to vector<8x384xf32>
    %18 = tpu.concatenate %1, %3, %5, %7, %9, %11, %13, %15, %17 in 0 : vector<8x384xf32>, vector<8x384xf32>, vector<8x384xf32>, vector<8x384xf32>, vector<8x384xf32>, vector<8x384xf32>, vector<8x384xf32>, vector<8x384xf32>, vector<8x384xf32> -> vector<72x384xf32>
    %c0_18 = arith.constant 0 : index
    %c0_19 = arith.constant 0 : index
    %19 = vector.load %arg2[%c0_18, %c0_19] : memref<8x72xf32, #tpu.memory_space<vmem>>, vector<8x72xf32>
    %cst = arith.constant dense<0.000000e+00> : vector<8x384xf32>
    %20 = tpu.matmul %19, %18, %cst {dimension_numbers = #tpu.dot_dimension_numbers<[1], [0], [0], [1], [0, 0, 1, 1], [], []>} : vector<8x72xf32>, vector<72x384xf32>, vector<8x384xf32> -> vector<8x384xf32>
    %cst_20 = arith.constant 0.000000e+00 : f32
    %21 = vector.broadcast %cst_20 : f32 to vector<8x384xf32>
    %22 = arith.maximumf %20, %21 : vector<8x384xf32>
    %c0_21 = arith.constant 0 : index
    %c0_22 = arith.constant 0 : index
    %c0_23 = arith.constant 0 : index
    %23 = vector.load %arg3[%c0_21, %c0_22, %c0_23] : memref<1x8x384xf32, #tpu.memory_space<vmem>>, vector<1x8x384xf32>
    %24 = vector.shape_cast %23 : vector<1x8x384xf32> to vector<8x384xf32>
    %25 = vector.shape_cast %22 : vector<8x384xf32> to vector<1x8x384xf32>
    tpu.vector_store %arg3[%c0_21, %c0_22, %c0_23], %25 {strides = array<i32>} : memref<1x8x384xf32, #tpu.memory_space<vmem>>, vector<1x8x384xf32>,
    return
  }
  func.func @transform_0(%arg0: i32) -> (i32, i32, i32) {
    %c0_i32 = arith.constant 0 : i32
    %c0_i32_0 = arith.constant 0 : i32
    %c0_i32_1 = arith.constant 0 : i32
    return %arg0, %c0_i32, %c0_i32_0 : i32, i32, i32
  }
  func.func @transform_1(%arg0: i32) -> (i32, i32) {
    %c0_i32 = arith.constant 0 : i32
    %c0_i32_0 = arith.constant 0 : i32
    %c0_i32_1 = arith.constant 0 : i32
    return %c0_i32, %c0_i32_0 : i32, i32
  }
  func.func @transform_2(%arg0: i32) -> (i32, i32, i32) {
    %c0_i32 = arith.constant 0 : i32
    %c0_i32_0 = arith.constant 0 : i32
    %c0_i32_1 = arith.constant 0 : i32
    return %arg0, %c0_i32, %c0_i32_0 : i32, i32, i32
  }
}

</mosaic_0001>

<bundles_post_ra>
// kernel: tpu_custom_call.1
= control target key start
LH: loop header
LB: loop body
LE: loop exit
PB: predicated region body
PF: predicated region fallthrough
CT: control target
= control target key end

     0   :  { %7 = vsyncpa [#allocation3], 0  ;;  %s1057_s0 = inlined_call_operand.hbm [shape: f32[2,8,432], index: 0, kind: input, shape index: {}]   ;;  %s1058_s1 = inlined_call_operand.hbm [shape: f32[8,72], index: 1, kind: input, shape index: {}]   ;;  %s1059_s2 = inlined_call_operand.hbm [shape: f32[2,8,384], index: 2, kind: output, shape index: {}]  }
   0x1   :  { %9 = vsyncpa [#allocation3 + $0x1], 0 }
   0x2   :  { %10 = vsyncpa [#allocation6], 0 }
   0x3   :  { %11 = vsyncpa [#allocation4], 0 }
   0x4   :  { %13 = vsyncpa [#allocation4 + $0x1], 0  ;;  %s816_s9 = smov 0   ;;  %s818_s10 = smov 0  }
   0x5   :  { %s820_s11 = smov 0   ;;  %s822_s12 = smov 0  }
   0x6 LB: > { %s837_s13 = sadd.s32 4294967295, %s786_s12   ;;  %s548_s14 = sadd.s32 4294967294, %s786_s12   ;;  %s786_s12 = sphi %s822_s12, %s1082_s12   ;;  %s782_s11 = sphi %s820_s11, %s1081_s11   ;;  %s778_s10 = sphi %s818_s10, %s1080_s10   ;;  %s774_s9 = sphi %s816_s9, %s1079_s9  }
   0x7   : > { %p39_p0 = scmp.ne.s32.totalorder %s778_s10, %s774_s9  ;;  %p1060_p1 = scmp.eq.s32.totalorder %s837_s13, 0 }
   0x8   : > { %p90_p3 = scmp.eq.s32.totalorder %s548_s14, 1  ;;  %p549_p5 = scmp.ge.s32.totalorder %s786_s12, 1 }
   0x9   : > { %p846_p4 = por %p1060_p1, %p39_p0  ;;  %p97_p7 = scmp.lt.s32.totalorder %s786_s12, 3 }
   0xa   : > { %p851_p6 = por %p90_p3, %p39_p0  ;;  %s788_s18 = smov [#allocation5]  }
   0xb   : > { %s1064_s15 = scalar_select %p846_p4, 1, 0 }
   0xc   : > { %s1065_s16 = scalar_select %p851_p6, 1, 0 }
   0xd   : > { %p856_p8 = pnand %p549_p5, %p97_p7  ;;  %s110_s19 = sshll.u32 %s788_s18, 4  ;;  %s111_s19 = int_to_ptr.vmem [resolvable:$true] %s110_s19 }
   0xe   : > { %s864_s20 = sadd.s32 1, %s786_s12   ;;  %s26_s24 = sadd.s32 1, %s782_s11 }
   0xf   : > { %s1066_s17 = scalar_select %p856_p8, 1, 0 }
  0x10   : > { %p605_p10 = pneg %p856_p8  ;;  %s23_s22 = ssub.s32 %s786_s12, %s864_s20 }
  0x11   : > { %p874_p12 = scmp.eq.s32.totalorder %s23_s22, 0  ;;  %p33_p13 = scmp.ne.s32.totalorder %s782_s11, %s778_s10 }
  0x12   : > { %p868_p11 = pnand %p605_p10, %p1060_p1  ;;  %s675_s25 = scalar_lea.vmem %s111_s19, 128 }
  0x13   : > { %p676_p3 = scmp.ne.s32.totalorder %s111_s19, %s675_s25  ;;  %p683_p9 = scmp.lt.s32.totalorder %s111_s19, %s111_s19 }
  0x14   : > { %p666_p0 = pneg %p868_p11  ;;  %p684_p2 = scmp.lt.s32.totalorder %s675_s25, %s675_s25 }
  0x16   : > { %p678_p5 = pnand %p676_p3, %p666_p0  ;;  %p685_p10 = por %p684_p2, %p683_p9 }
  0x18   : > { %p679_p7 = pneg %p678_p5 }
  0x1a   : > { %p686_p1 = pnand %p685_p10, %p679_p7 }
  0x1c   : > { %689 = shalt.err (!%p686_p1)
}
  0x1d   : > { %608 = dma.hbm_to_vmem [thread:$0]  (!%p868_p11), %s1058_s1, 128, %s111_s19, [#allocation6]  }
  0x1e   : > { %s891_s28 = scalar_select %p874_p12, %s782_s11, %s26_s24  }
  0x1f   : > { %p34_p1 = scmp.eq.s32.totalorder %s786_s12, 0  ;;  %p1069_p2 = scmp.eq.s32.totalorder %s837_s13, 1 }
  0x20   : > { %p618_p0 = scmp.lt.s32.totalorder %s786_s12, 2  ;;  %s121_s30 = sand.u32 1, %s782_s11  }
  0x21   : > { %p899_p9 = por %p1069_p2, %p33_p13  ;;  %p35_p3 = por %p34_p1, %p33_p13 }
  0x22   : > { %s552_s3 = sshll.u32 %s121_s30, 5  ;;  %s563_s4 = sshll.u32 %s786_s12, 9 }
  0x23   : > { %s1070_s29 = scalar_select %p899_p9, 1, 0 }
  0x24   : > { %s912_s7 = scalar_lea.hbm %s1057_s0, %s563_s4  ;;  %s125_s8 = scalar_lea.vmem [#allocation2], %s552_s3 }
  0x25   : > { %s133_s14 = sshll.u32 %s125_s8, 4  ;;  %p914_p11 = pnand %p618_p0, %p35_p3  ;;  %s134_s14 = int_to_ptr.vmem [resolvable:$true] %s133_s14 }
  0x26   : > { %s122_s19 = scalar_lea.sflag [#allocation3], %s121_s30  ;;  %s690_s21 = scalar_lea.hbm %s912_s7, 512 }
  0x27   : > { %p691_p12 = scmp.ne.s32.totalorder %s912_s7, %s690_s21  ;;  %p692_p13 = pneg %p914_p11 }
  0x28   : > { %s695_s24 = scalar_lea.hbm %s1057_s0, 1024  ;;  %p696_p10 = scmp.lt.s32.totalorder %s912_s7, %s1057_s0 }
  0x29   : > { %p693_p5 = pnand %p692_p13, %p691_p12  ;;  %p697_p1 = scmp.lt.s32.totalorder %s695_s24, %s690_s21 }
  0x2b   : > { %p694_p7 = pneg %p693_p5  ;;  %p698_p2 = por %p697_p1, %p696_p10 }
  0x2d   : > { %p699_p0 = pnand %p698_p2, %p694_p7 }
  0x2f   : > { %702 = shalt.err (!%p699_p0)
}
  0x30   : > { %s703_s27 = scalar_lea.vmem %s134_s14, 512  ;;  %s789_s30 = smov [#allocation2]  }
  0x31   : > { %p704_p3 = scmp.ne.s32.totalorder %s134_s14, %s703_s27  ;;  %s708_s3 = sshll.u32 %s789_s30, 4  ;;  %s709_s3 = int_to_ptr.vmem [resolvable:$false] %s708_s3 }
  0x32   : > { %s710_s4 = scalar_lea.vmem %s709_s3, 1024  ;;  %p711_p12 = scmp.lt.s32.totalorder %s134_s14, %s709_s3 }
  0x33   : > { %p706_p6 = pnand %p704_p3, %p692_p13  ;;  %p712_p5 = scmp.lt.s32.totalorder %s710_s4, %s703_s27 }
  0x35   : > { %p707_p9 = pneg %p706_p6  ;;  %p713_p4 = por %p712_p5, %p711_p12 }
  0x37   : > { %p714_p8 = pnand %p713_p4, %p707_p9 }
  0x39   : > { %717 = shalt.err (!%p714_p8)
}
  0x3a   : > { %612 = dma.hbm_to_vmem [thread:$0]  (!%p914_p11), %s912_s7, 512, %s134_s14, %s122_s19  }
  0x3b   : > { %p1072_p7 = scmp.ne.s32.totalorder %s1066_s17, 0 }
  0x3c   : > { %s935_s5 = sand.u32 (!%p1072_p7), 1, %s778_s10   ;;  %p1073_p6 = scmp.ne.s32.totalorder (!%p1072_p7), %s1064_s15, 0 }
  0x3d   : > { %142 = sbr.rel (%p1072_p7) target bundleno = 461 (0x1cd), region = 28  ;;  %s556_s6 = sshll.u32 (!%p1072_p7), %s935_s5, 5 }
  0x3e   : > { %s145_s8 = scalar_lea.sflag (!%p1072_p7), [#allocation3], %s935_s5  ;;  %s148_s21 = scalar_lea.vmem (!%p1072_p7), [#allocation2], %s556_s6 }
  0x42   : > { %761 = dma.done.wait (%p1073_p6), %s145_s8, 512  }
  0x43   : > { %763 = vsyncadd (%p1073_p6), %s145_s8, 4294966784  ;;  %p1074_p4 = scmp.eq.s32.totalorder %s837_s13, 0 }
  0x45   : > { %765 = dma.done.wait (%p1074_p4), [#allocation6], 128   ;;  %p1075_p8 = pmov %p1074_p4 }
  0x46   : > { %v947_v0 = vld [vmem:[%s148_s21 + $0x8] sm:$0xff]  ;;  %v949_v1 = vld [vmem:[%s148_s21] sm:$0xff]  ;;  %v790_v2 = vmov 0.0   ;;  %s791_s17 = smov 90   ;;  %v955_v3 = vld [vmem:[%s148_s21 + $0x10] sm:$0xff]  ;;  %s792_s15 = smov 91  }
  0x47   : > { %767 = vsyncadd (%p1075_p8), [#allocation6], 4294967168  ;;  %574 = vmatprep.subr.mxu1 %v790_v2  ;;  %370 = vmatprep.mubr.f32.mxu0 %v790_v2  ;;  %v176_v4 = vld [vmem:[%s148_s21 + $0x18] sm:$0xff]  ;;  %s793_s7 = smov 92   ;;  %s794_s14 = smov 108   ;;  %vm799_vm0 = vmmov 0  }
  0x48   : > { %288 = vrot.lane.b32.xlu0 %v947_v0, %s791_s17  ;;  %286 = vrot.lane.b32.xlu1 %v949_v1, %s791_s17  ;;  %s795_s18 = smov 109   ;;  %s796_s19 = smov 110   ;;  %vm294_vm1 = vcmask 736256   ;;  %vm279_vm2 = vcmask 744448   ;;  %vm264_vm3 = vcmask 752640   ;;  %vm249_vm4 = vcmask 883712  }
  0x49   : > { %s797_s22 = smov 126   ;;  %s798_s23 = smov 127   ;;  %592 = vmatprep.mubr.msk.f32.mxu1 %vm799_vm0, %v790_v2  ;;  %vm234_vm5 = vcmask 891904   ;;  %vm219_vm6 = vcmask 900096   ;;  %vm204_vm7 = vcmask 1031168   ;;  %vm189_vm8 = vcmask 1039360  }
  0x4a   : > { %v301_v57 = vld [vmem:[#allocation5] sm:$0xff]  ;;  %vm302_vm9 = vcmask 588800   ;;  %s595_s24 = smul.u32 24, %s935_s5  ;;  %s454_s6 = scalar_lea.sflag [#allocation4], %s935_s5 }
  0x4b   : > { %s596_s25 = smul.u32 384, %s837_s13  ;;  %p1076_p11 = scmp.ne.s32.totalorder %s1070_s29, 0 }
  0x4c   : > { %290 = vrot.lane.b32.xlu0 %v955_v3, %s791_s17  ;;  %273 = vrot.lane.b32.xlu1 %v947_v0, %s792_s15  ;;  %s172_s26 = scalar_lea.vmem [#allocation7], %s595_s24  ;;  %s800_s13 = smov [#allocation7]  }
  0x4d   : > { %s468_s27 = sshll.u32 %s172_s26, 4  ;;  %s1020_s4 = scalar_lea.hbm %s1059_s2, %s596_s25  ;;  %s469_s27 = int_to_ptr.vmem [resolvable:$true] %s468_s27 }
  0x4e   : > { %s718_s8 = scalar_lea.vmem %s469_s27, 384  ;;  %s722_s21 = sshll.u32 %s800_s13, 4  ;;  %s723_s21 = int_to_ptr.vmem [resolvable:$false] %s722_s21 }
  0x4f   : > { %p719_p9 = scmp.ne.s32.totalorder %s469_s27, %s718_s8  ;;  %p725_p1 = scmp.lt.s32.totalorder %s469_s27, %s723_s21 }
  0x50   : > { %275 = vrot.lane.b32.xlu0 %v955_v3, %s792_s15  ;;  %271 = vrot.lane.b32.xlu1 %v949_v1, %s792_s15 }
  0x51   : > { %p720_p13 = pnand %p719_p9, %p1076_p11 }
  0x53   : > { %p721_p10 = pneg %p720_p13 }
  0x54   : > { %292 = vrot.lane.b32.xlu0 %v176_v4, %s791_s17  ;;  %258 = vrot.lane.b32.xlu1 %v947_v0, %s793_s7  ;;  %s724_s17 = scalar_lea.vmem %s723_s21, 768 }
  0x55   : > { %p726_p2 = scmp.lt.s32.totalorder %s724_s17, %s718_s8 }
  0x57   : > { %p727_p0 = por %p726_p2, %p725_p1 }
  0x58   : > { %260 = vrot.lane.b32.xlu0 %v955_v3, %s793_s7  ;;  %256 = vrot.lane.b32.xlu1 %v949_v1, %s793_s7 }
  0x59   : > { %p728_p3 = pnand %p727_p0, %p721_p10 }
  0x5c   : > { %277 = vrot.lane.b32.xlu0 %v176_v4, %s792_s15  ;;  %243 = vrot.lane.b32.xlu1 %v947_v0, %s794_s14 }
  0x60   : > { %245 = vrot.lane.b32.xlu0 %v955_v3, %s794_s14  ;;  %241 = vrot.lane.b32.xlu1 %v949_v1, %s794_s14 }
  0x64   : > { %262 = vrot.lane.b32.xlu0 %v176_v4, %s793_s7  ;;  %228 = vrot.lane.b32.xlu1 %v947_v0, %s795_s18 }
  0x68   : > { %230 = vrot.lane.b32.xlu0 %v955_v3, %s795_s18  ;;  %226 = vrot.lane.b32.xlu1 %v949_v1, %s795_s18 }
  0x6c   : > { %247 = vrot.lane.b32.xlu0 %v176_v4, %s794_s14  ;;  %213 = vrot.lane.b32.xlu1 %v947_v0, %s796_s19 }
  0x70   : > { %215 = vrot.lane.b32.xlu0 %v955_v3, %s796_s19  ;;  %211 = vrot.lane.b32.xlu1 %v949_v1, %s796_s19 }
  0x74   : > { %232 = vrot.lane.b32.xlu0 %v176_v4, %s795_s18  ;;  %198 = vrot.lane.b32.xlu1 %v947_v0, %s797_s22 }
  0x78   : > { %200 = vrot.lane.b32.xlu0 %v955_v3, %s797_s22  ;;  %196 = vrot.lane.b32.xlu1 %v949_v1, %s797_s22 }
  0x7c   : > { %217 = vrot.lane.b32.xlu0 %v176_v4, %s796_s19  ;;  %183 = vrot.lane.b32.xlu1 %v947_v0, %s798_s23 }
  0x80   : > { %185 = vrot.lane.b32.xlu0 %v955_v3, %s798_s23  ;;  %181 = vrot.lane.b32.xlu1 %v949_v1, %s798_s23 }
  0x84   : > { %202 = vrot.lane.b32.xlu0 %v176_v4, %s797_s22  ;;  %187 = vrot.lane.b32.xlu1 %v176_v4, %s798_s23 }
  0xba   : > { %v289_v5 = vpop.permute.xlu0 %288  ;;  %v287_v6 = vpop.permute.xlu1 %286 }
  0xbb   : > { %v295_v10 = vsel %vm294_vm1, %v287_v6, %v289_v5 }
  0xbe   : > { %v291_v7 = vpop.permute.xlu0 %290  ;;  %v274_v8 = vpop.permute.xlu1 %273 }
  0xbf   : > { %v296_v9 = vsel %vm294_vm1, %v289_v5, %v291_v7 }
  0xc0   : > { %320 = vmatprep.subr.mxu0 %v296_v9 }
  0xc1   : > { %321 = vmatpush1.msra.mxu0 %v295_v10 }
  0xc2   : > { %v276_v11 = vpop.permute.xlu0 %275  ;;  %v272_v12 = vpop.permute.xlu1 %271 }
  0xc3   : > { %v281_v13 = vsel %vm279_vm2, %v274_v8, %v276_v11  ;;  %v280_v14 = vsel %vm279_vm2, %v272_v12, %v274_v8 }
  0xc4   : > { %322 = vmatprep.subr.mxu0 %v281_v13 }
  0xc5   : > { %323 = vmatpush1.msra.mxu0 %v280_v14 }
  0xc6   : > { %v293_v15 = vpop.permute.xlu0 %292  ;;  %v259_v16 = vpop.permute.xlu1 %258 }
  0xc7   : > { %v297_v17 = vsel %vm294_vm1, %v291_v7, %v293_v15 }
  0xc8   : > { %575 = vmatpush3.msra.mxu1 %v297_v17 }
  0xc9   : > { %576 = vmatprep.subr.mxu1 %v790_v2 }
  0xca   : > { %v261_v18 = vpop.permute.xlu0 %260  ;;  %v257_v19 = vpop.permute.xlu1 %256 }
  0xcb   : > { %v266_v20 = vsel %vm264_vm3, %v259_v16, %v261_v18  ;;  %v265_v21 = vsel %vm264_vm3, %v257_v19, %v259_v16 }
  0xcc   : > { %324 = vmatprep.subr.mxu0 %v266_v20 }
  0xcd   : > { %325 = vmatpush1.msra.mxu0 %v265_v21 }
  0xce   : > { %v278_v22 = vpop.permute.xlu0 %277  ;;  %v244_v23 = vpop.permute.xlu1 %243 }
  0xcf   : > { %v282_v24 = vsel %vm279_vm2, %v276_v11, %v278_v22 }
  0xd0   : > { %577 = vmatpush3.msra.mxu1 %v282_v24 }
  0xd1   : > { %578 = vmatprep.subr.mxu1 %v790_v2 }
  0xd2   : > { %v246_v25 = vpop.permute.xlu0 %245  ;;  %v242_v26 = vpop.permute.xlu1 %241 }
  0xd3   : > { %v251_v27 = vsel %vm249_vm4, %v244_v23, %v246_v25  ;;  %v250_v28 = vsel %vm249_vm4, %v242_v26, %v244_v23 }
  0xd4   : > { %326 = vmatprep.subr.mxu0 %v251_v27 }
  0xd5   : > { %327 = vmatpush1.msra.mxu0 %v250_v28 }
  0xd6   : > { %v263_v29 = vpop.permute.xlu0 %262  ;;  %v229_v30 = vpop.permute.xlu1 %228 }
  0xd7   : > { %v267_v31 = vsel %vm264_vm3, %v261_v18, %v263_v29 }
  0xd8   : > { %579 = vmatpush3.msra.mxu1 %v267_v31 }
  0xd9   : > { %580 = vmatprep.subr.mxu1 %v790_v2 }
  0xda   : > { %v231_v32 = vpop.permute.xlu0 %230  ;;  %v227_v33 = vpop.permute.xlu1 %226 }
  0xdb   : > { %v236_v34 = vsel %vm234_vm5, %v229_v30, %v231_v32  ;;  %v235_v35 = vsel %vm234_vm5, %v227_v33, %v229_v30 }
  0xdc   : > { %328 = vmatprep.subr.mxu0 %v236_v34 }
  0xdd   : > { %329 = vmatpush1.msra.mxu0 %v235_v35 }
  0xde   : > { %v248_v36 = vpop.permute.xlu0 %247  ;;  %v214_v37 = vpop.permute.xlu1 %213 }
  0xdf   : > { %v252_v38 = vsel %vm249_vm4, %v246_v25, %v248_v36 }
  0xe0   : > { %581 = vmatpush3.msra.mxu1 %v252_v38 }
  0xe1   : > { %582 = vmatprep.subr.mxu1 %v790_v2 }
  0xe2   : > { %v216_v39 = vpop.permute.xlu0 %215  ;;  %v212_v40 = vpop.permute.xlu1 %211 }
  0xe3   : > { %v221_v41 = vsel %vm219_vm6, %v214_v37, %v216_v39  ;;  %v220_v42 = vsel %vm219_vm6, %v212_v40, %v214_v37 }
  0xe4   : > { %330 = vmatprep.subr.mxu0 %v221_v41 }
  0xe5   : > { %331 = vmatpush1.msra.mxu0 %v220_v42 }
  0xe6   : > { %v233_v43 = vpop.permute.xlu0 %232  ;;  %v199_v44 = vpop.permute.xlu1 %198 }
  0xe7   : > { %v237_v45 = vsel %vm234_vm5, %v231_v32, %v233_v43 }
  0xe8   : > { %583 = vmatpush3.msra.mxu1 %v237_v45 }
  0xe9   : > { %584 = vmatprep.subr.mxu1 %v790_v2 }
  0xea   : > { %v201_v46 = vpop.permute.xlu0 %200  ;;  %v197_v47 = vpop.permute.xlu1 %196 }
  0xeb   : > { %v206_v48 = vsel %vm204_vm7, %v199_v44, %v201_v46  ;;  %v205_v49 = vsel %vm204_vm7, %v197_v47, %v199_v44 }
  0xec   : > { %332 = vmatprep.subr.mxu0 %v206_v48 }
  0xed   : > { %333 = vmatpush1.msra.mxu0 %v205_v49 }
  0xee   : > { %v218_v50 = vpop.permute.xlu0 %217  ;;  %v184_v51 = vpop.permute.xlu1 %183 }
  0xef   : > { %v222_v52 = vsel %vm219_vm6, %v216_v39, %v218_v50 }
  0xf0   : > { %585 = vmatpush3.msra.mxu1 %v222_v52 }
  0xf1   : > { %586 = vmatprep.subr.mxu1 %v790_v2 }
  0xf2   : > { %v186_v53 = vpop.permute.xlu0 %185  ;;  %v182_v54 = vpop.permute.xlu1 %181 }
  0xf3   : > { %v191_v55 = vsel %vm189_vm8, %v184_v51, %v186_v53  ;;  %v190_v56 = vsel %vm189_vm8, %v182_v54, %v184_v51 }
  0xf4   : > { %334 = vmatprep.subr.mxu0 %v191_v55 }
  0xf5   : > { %335 = vmatpush1.msra.mxu0 %v190_v56 }
  0xf6   : > { %v203_v58 = vpop.permute.xlu0 %202  ;;  %v188_v59 = vpop.permute.xlu1 %187  ;;  %336 = vmatprep.subr.mxu0 %v947_v0 }
  0xf7   : > { %337 = vmatpush1.msra.mxu0 %v949_v1  ;;  %v207_v60 = vsel %vm204_vm7, %v201_v46, %v203_v58  ;;  %v192_v61 = vsel %vm189_vm8, %v186_v53, %v188_v59 }
  0xf8   : > { %587 = vmatpush3.msra.mxu1 %v207_v60  ;;  %558 = vmatmul.mubr.msk.f32.vlgmr.msra.gmra.mxu0 %vm302_vm9, %v301_v57 }
  0xf9   : > { %588 = vmatprep.subr.mxu1 %v790_v2 }
  0xfa   : > { %589 = vmatpush3.msra.mxu1 %v192_v61 }
  0xfb   : > { %590 = vmatprep.subr.mxu1 %v790_v2 }
  0xfc   : > { %591 = vmatpush3.msra.mxu1 %v955_v3 }
  0xfd   : > { %593 = vmatmul.mubr.msk.f32.vlgmr.msra.gmra.mxu1 %vm302_vm9, %v301_v57 }
 0x1b8   : > { %v372_v62 = vpop.f32.mrf.mxu0 }
 0x1b9   : > { %v447_v63 = vmax.f32 %v372_v62, 0.0 }
 0x1ba   : > { %v374_v0 = vpop.f32.mrf.mxu0 }
 0x1bb   : > { %450 = vst [vmem:[%s172_s26] sm:$0xff] %v447_v63  ;;  %v448_v1 = vmax.f32 %v374_v0, 0.0 }
 0x1bd   : > { %451 = vst [vmem:[%s172_s26 + $0x8] sm:$0xff] %v448_v1  ;;  %v443_v4 = vpop.f32.mrf.mxu1 }
 0x1be   : > { %v449_v5 = vmax.f32 %v443_v4, 0.0 }
 0x1bf   : > { %v594_v2 = vpop.f32.mrf.mxu1 }
 0x1c0   : > { %452 = vst [vmem:[%s172_s26 + $0x10] sm:$0xff] %v449_v5 }
 0x1c1   : > { %731 = shalt.err (!%p728_p3)
}
 0x1c2   : > { %s732_s15 = scalar_lea.hbm %s1020_s4, 384  ;;  %s736_s14 = scalar_lea.hbm %s1059_s2, 768 }
 0x1c3   : > { %p733_p12 = scmp.ne.s32.totalorder %s1020_s4, %s732_s15  ;;  %p737_p6 = scmp.lt.s32.totalorder %s1020_s4, %s1059_s2 }
 0x1c4   : > { %p738_p4 = scmp.lt.s32.totalorder %s736_s14, %s732_s15 }
 0x1c5   : > { %p734_p5 = pnand %p733_p12, %p1076_p11 }
 0x1c6   : > { %p739_p8 = por %p738_p4, %p737_p6 }
 0x1c7   : > { %p735_p7 = pneg %p734_p5 }
 0x1c9   : > { %p740_p9 = pnand %p739_p8, %p735_p7 }
 0x1cb   : > { %743 = shalt.err (!%p740_p9)
}
 0x1cc   : > { %603 = dma.vmem_to_hbm [thread:$0]  (%p1076_p11), %s469_s27, 384, %s1020_s4, %s454_s6  }
 0x1cd PF: > { %s480_s22 = sand.u32 1, %s774_s9   ;;  %p1077_p13 = scmp.ne.s32.totalorder %s1065_s16, 0 }
 0x1ce   : > { %p1078_p10 = scmp.ge.s32.totalorder %s786_s12, 2  ;;  %s481_s23 = scalar_lea.sflag [#allocation4], %s480_s22 }
 0x1d0   : > { %p614_p1 = pnand %p1078_p10, %p1077_p13 }
 0x1d2   : > { %p615_p2 = pneg %p614_p1 }
 0x1d4   : > { %769 = dma.done.wait (%p615_p2), %s481_s23, 384  }
 0x1d5   : > { %771 = vsyncadd (%p615_p2), %s481_s23, 4294966912  ;;  %p16_p0 = scmp.ge.s32.totalorder %s864_s20, 4   ;;  %s1079_s9 = smov %s778_s10 }
 0x1d6   : > { %s1080_s10 = smov %s782_s11  ;;  %s1081_s11 = smov %s891_s28 }
 0x1d7   : > { %s1082_s12 = smov %s864_s20  ;;  %18 = sbr.rel (!%p16_p0) target bundleno = 6 (0x6), region = 77 }
 0x1dc   :  { %486 = vsyncpa [#allocation3], 1 }
 0x1dd   :  { %488 = vsyncpa [#allocation3 + $0x1], 1 }
 0x1de   :  { %489 = vsyncpa [#allocation6], 1 }
 0x1df   :  { %490 = vsyncpa [#allocation4], 1 }
 0x1e0   :  { %492 = vsyncpa [#allocation4 + $0x1], 1 }

</bundles_post_ra>
